<compile_context>
chip_gen: v6e
topology: v6e:2x2x1
jax: 0.10.0
libtpu: 0.0.40
codegen_flags: <defaults>
</compile_context>

<pallas_src>
import functools

import jax
import jax.numpy as jnp
from jax.experimental import pallas as pl
from jax.experimental.pallas import tpu as pltpu

_LANE = 128
_SUBLANE = 8


def _round_up(x, m):
    return (x + m - 1) // m * m


def _mlp_body(e1, e2, e3, x1_ref, x2_ref, w1a_ref, w1b_ref,
              w2_ref, w3_ref, w4_ref, b4_ref, o_ref, *, out_dim):
    """Shared 3-layer MLP + output head; e1/e2/e3 are f32 (TB, Lp) embedding adds."""
    cdt = w1a_ref.dtype

    # Block 1: split matmul replaces concat(xtj1, xt) @ w1.
    h = (jnp.dot(x1_ref[...].astype(cdt), w1a_ref[...],
                 preferred_element_type=jnp.float32)
         + jnp.dot(x2_ref[...].astype(cdt), w1b_ref[...],
                   preferred_element_type=jnp.float32)
         + e1)
    h = jnp.maximum(h, 0.0)

    # Block 2.
    h = jnp.dot(h.astype(cdt), w2_ref[...],
                preferred_element_type=jnp.float32) + e2
    h = jnp.maximum(h, 0.0)

    # Block 3.
    h = jnp.dot(h.astype(cdt), w3_ref[...],
                preferred_element_type=jnp.float32) + e3
    h = jnp.maximum(h, 0.0)

    # Output head + sigmoid.  Only the real out_dim columns are stored (narrow
    # masked store; avoids padded HBM writeback + a wrapper-side slice pass).
    y = (jnp.dot(h.astype(cdt), w4_ref[...],
                 preferred_element_type=jnp.float32)
         + b4_ref[...].astype(jnp.float32))
    o_ref[...] = jax.nn.sigmoid(y[:, :out_dim])


def _disc_kernel_onehot(t_ref, x1_ref, x2_ref,
                        w1a_ref, w1b_ref, emb_ref,
                        w2_ref, w3_ref, w4_ref, b4_ref,
                        o_ref, *, Lp, out_dim):
    """Small n_steps: one fused one_hot @ (n_steps, 3*Lp) matmul per tile."""
    cdt = w1a_ref.dtype
    tb = t_ref.shape[0]
    n_steps = emb_ref.shape[0]

    steps = jax.lax.broadcasted_iota(jnp.int32, (tb, n_steps), 1)
    one_hot = (steps == t_ref[...]).astype(cdt)
    e = jnp.dot(one_hot, emb_ref[...], preferred_element_type=jnp.float32)
    _mlp_body(e[:, 0 * Lp:1 * Lp], e[:, 1 * Lp:2 * Lp], e[:, 2 * Lp:3 * Lp],
              x1_ref, x2_ref, w1a_ref, w1b_ref, w2_ref, w3_ref, w4_ref, b4_ref,
              o_ref, out_dim=out_dim)


def _disc_kernel_gather(emb_ref, x1_ref, x2_ref,
                        w1a_ref, w1b_ref,
                        w2_ref, w3_ref, w4_ref, b4_ref,
                        o_ref, *, Lp, out_dim):
    """Large n_steps: embedding rows pre-gathered in the wrapper, streamed per tile."""
    e = emb_ref[...].astype(jnp.float32)
    _mlp_body(e[:, 0 * Lp:1 * Lp], e[:, 1 * Lp:2 * Lp], e[:, 2 * Lp:3 * Lp],
              x1_ref, x2_ref, w1a_ref, w1b_ref, w2_ref, w3_ref, w4_ref, b4_ref,
              o_ref, out_dim=out_dim)


def prepare_params(params, xtj1_dim, compute_dtype=jnp.bfloat16):
    """Fold b1..b3 into the step-embedding tables, fuse them into one (n_steps, 3*Lp)
    table, split w1, and zero-pad latent / output feature dims to multiples of 128
    (lane-dense).  Zero padding is exact: padded lanes stay 0 through Linear+ReLU and
    the kernel never stores padded output columns.  bf16 is the default compute dtype
    on all generations (bf16 MXU everywhere); accumulation stays f32 in-kernel."""
    L = params["w1"].shape[1]
    O = params["w4"].shape[1]
    Lp = _round_up(L, _LANE)
    Op = _round_up(O, _LANE)

    def pad_cols(a, cols):
        return jnp.pad(a, ((0, 0), (0, cols - a.shape[1])))

    def pad_both(a, rows, cols):
        return jnp.pad(a, ((0, rows - a.shape[0]), (0, cols - a.shape[1])))

    c = lambda a: a.astype(compute_dtype)
    w1 = params["w1"]
    emb_all = jnp.concatenate(
        [pad_cols(params[f"emb{i}"] + params[f"b{i}"], Lp) for i in (1, 2, 3)],
        axis=1)  # (n_steps, 3*Lp), biases folded in
    return dict(
        w1a=c(pad_cols(w1[:xtj1_dim], Lp)),
        w1b=c(pad_cols(w1[xtj1_dim:], Lp)),
        emb_all=c(emb_all),
        w2=c(pad_both(params["w2"], Lp, Lp)),
        w3=c(pad_both(params["w3"], Lp, Lp)),
        w4=c(pad_both(params["w4"], Lp, Op)),
        b4=c(pad_cols(params["b4"], Op)),
    )


@functools.partial(jax.jit,
                   static_argnames=("out_dim", "batch_tile", "use_onehot_emb"))
def discriminator_noise_x(xtj1, xt, t, prepped, *, out_dim, batch_tile=1024,
                          use_onehot_emb=None):
    """Forward pass matching the PyTorch module semantics.

    xtj1: [B, d1] f32, xt: [B, d2] f32, t: [B] int32; prepped from prepare_params.
    Returns [B, out_dim] f32 in (0, 1).
    """
    B, d1 = xtj1.shape
    d2 = xt.shape[1]
    Lp = prepped["w2"].shape[0]
    Op = prepped["w4"].shape[1]
    n_steps = prepped["emb_all"].shape[0]
    emb_isz = prepped["emb_all"].dtype.itemsize

    if use_onehot_emb is None:
        # One-hot matmul wins while the schedule is short; once n_steps dwarfs the
        # latent width the one-hot FLOPs/VMEM dominate -> stream gathered rows.
        use_onehot_emb = n_steps <= 2 * Lp

    # ---- batch tile choice --------------------------------------------------
    g = 16 if B >= 16 else _SUBLANE          # 16 keeps bf16 activations sublane-packed
    tb = max(g, (int(batch_tile) // g) * g)  # force a legal multiple of the granule
    # Guarantee >= 2 grid steps when the batch allows it, so the "parallel" axis can
    # shard across v7x's two TensorCores (costless on single-TC v5e/v6e).
    half = _round_up((_round_up(B, g) + 1) // 2, g)
    TB = min(tb, max(half, g))
    Bp = _round_up(B, TB)

    x1 = xtj1.astype(jnp.float32)
    x2 = xt.astype(jnp.float32)
    tt = t.astype(jnp.int32)
    if Bp != B:
        x1 = jnp.pad(x1, ((0, Bp - B), (0, 0)))
        x2 = jnp.pad(x2, ((0, Bp - B), (0, 0)))
        tt = jnp.pad(tt, (0, Bp - B))        # pad index 0 is valid; rows sliced off

    batch_map = lambda i: (i, 0)
    const_map = lambda i: (0, 0)

    def resident(shape):
        # Constant block index -> single buffer (default double-buffering would only
        # double the resident VMEM for these operands).
        return pl.BlockSpec(shape, const_map, pipeline_mode=pl.Buffered(1))

    if use_onehot_emb:
        kernel = functools.partial(_disc_kernel_onehot, Lp=Lp, out_dim=out_dim)
        lead_ops = (tt.reshape(Bp, 1),)
        lead_specs = [pl.BlockSpec((TB, 1), batch_map)]
        emb_ops = (prepped["emb_all"],)
        emb_specs = [resident((n_steps, 3 * Lp))]
        emb_flops = 2 * n_steps * 3 * Lp
        per_row_in_bytes = (d1 + d2) * 4 + 4
    else:
        kernel = functools.partial(_disc_kernel_gather, Lp=Lp, out_dim=out_dim)
        emb_rows = jnp.take(prepped["emb_all"], tt, axis=0)      # (Bp, 3*Lp)
        lead_ops = (emb_rows,)
        lead_specs = [pl.BlockSpec((TB, 3 * Lp), batch_map)]
        emb_ops = ()
        emb_specs = []
        emb_flops = 0
        per_row_in_bytes = (d1 + d2) * 4 + 3 * Lp * emb_isz

    operands = lead_ops + (x1, x2, prepped["w1a"], prepped["w1b"]) + emb_ops + (
        prepped["w2"], prepped["w3"], prepped["w4"], prepped["b4"])
    in_specs = (lead_specs
                + [pl.BlockSpec((TB, d1), batch_map),
                   pl.BlockSpec((TB, d2), batch_map),
                   resident((d1, Lp)), resident((d2, Lp))]
                + emb_specs
                + [resident((Lp, Lp)), resident((Lp, Lp)),
                   resident((Lp, Op)), resident((1, Op))])

    # ---- VMEM budget / cost hints -------------------------------------------
    const_bytes = sum(int(p.size) * p.dtype.itemsize
                      for p in (prepped["w1a"], prepped["w1b"], prepped["w2"],
                                prepped["w3"], prepped["w4"], prepped["b4"]))
    if use_onehot_emb:
        const_bytes += int(prepped["emb_all"].size) * emb_isz
    tile_bytes = TB * (per_row_in_bytes + out_dim * 4)
    live_bytes = 8 * TB * Lp * 4            # generous: in-flight f32 activations
    vmem_limit = int(const_bytes + 2 * tile_bytes + live_bytes + (4 << 20))
    vmem_limit = min(64 << 20, max(32 << 20, vmem_limit))

    flops = Bp * (2 * (d1 + d2) * Lp + 4 * Lp * Lp + 2 * Lp * Op + emb_flops)
    bytes_accessed = int(const_bytes + Bp * (per_row_in_bytes + out_dim * 4))

    out = pl.pallas_call(
        kernel,
        out_shape=jax.ShapeDtypeStruct((Bp, out_dim), jnp.float32),
        grid=(Bp // TB,),
        in_specs=in_specs,
        out_specs=pl.BlockSpec((TB, out_dim), batch_map),
        compiler_params=pltpu.CompilerParams(
            dimension_semantics=("parallel",),
            vmem_limit_bytes=vmem_limit),
        cost_estimate=pl.CostEstimate(
            flops=flops, transcendentals=Bp * out_dim,
            bytes_accessed=bytes_accessed),
    )(*operands)

    return out[:B] if Bp != B else out


def init_params(key, input_dim, latent_dim, output_dim, n_steps):
    ks = jax.random.split(key, 11)

    def lin(kw, kb, fan_in, fan_out):
        bound = 1.0 / jnp.sqrt(fan_in)
        w = jax.random.uniform(kw, (fan_in, fan_out), jnp.float32, -bound, bound)
        b = jax.random.uniform(kb, (1, fan_out), jnp.float32, -bound, bound)
        return w, b

    w1, b1 = lin(ks[0], ks[1], input_dim, latent_dim)
    w2, b2 = lin(ks[2], ks[3], latent_dim, latent_dim)
    w3, b3 = lin(ks[4], ks[5], latent_dim, latent_dim)
    w4, b4 = lin(ks[6], ks[7], latent_dim, output_dim)
    emb1 = jax.random.normal(ks[8], (n_steps, latent_dim), jnp.float32)
    emb2 = jax.random.normal(ks[9], (n_steps, latent_dim), jnp.float32)
    emb3 = jax.random.normal(ks[10], (n_steps, latent_dim), jnp.float32)
    return dict(w1=w1, b1=b1, w2=w2, b2=b2, w3=w3, b3=b3, w4=w4, b4=b4,
                emb1=emb1, emb2=emb2, emb3=emb3)


def _reference(xtj1, xt, t, p):
    x = jnp.concatenate((xtj1, xt), axis=1)
    for i in (1, 2, 3):
        x = x @ p[f"w{i}"] + p[f"b{i}"] + p[f"emb{i}"][t]
        x = jnp.maximum(x, 0.0)
    x = x @ p["w4"] + p["b4"]
    return jax.nn.sigmoid(x)


if __name__ == "__main__":
    B = 8
    half_dim = 16
    input_dim = 2 * half_dim   # concatenated dim feeding the first Linear
    latent_dim = 32            # toy size; lane padding to 128 handled in prepare_params
    output_dim = 4
    n_steps = 8

    key = jax.random.PRNGKey(0)
    k1, k2, k3, kp = jax.random.split(key, 4)
    xtj1 = jax.random.normal(k1, (B, half_dim), jnp.float32)
    xt = jax.random.normal(k2, (B, half_dim), jnp.float32)
    t = jax.random.randint(k3, (B,), 0, n_steps, jnp.int32)

    params = init_params(kp, input_dim, latent_dim, output_dim, n_steps)
    ref = _reference(xtj1, xt, t, params)

    # f32 path: exact vs reference, both embedding strategies.
    prepped_f32 = prepare_params(params, half_dim, jnp.float32)
    out = jax.block_until_ready(
        discriminator_noise_x(xtj1, xt, t, prepped_f32, out_dim=output_dim))
    assert out.shape == (B, output_dim)
    assert jnp.allclose(out, ref, atol=1e-4, rtol=1e-4), "f32 one-hot path mismatch"

    out_g = jax.block_until_ready(
        discriminator_noise_x(xtj1, xt, t, prepped_f32, out_dim=output_dim,
                              use_onehot_emb=False))
    assert jnp.allclose(out_g, ref, atol=1e-4, rtol=1e-4), "f32 gather path mismatch"

    # Default bf16 path (bf16 weights/matmul inputs, f32 accumulation) — the right
    # choice on v5e/v6e/v7x alike since all three MXUs are native bf16.
    prepped_bf16 = prepare_params(params, half_dim)
    out_bf16 = jax.block_until_ready(
        discriminator_noise_x(xtj1, xt, t, prepped_bf16, out_dim=output_dim))
    assert out_bf16.shape == (B, output_dim)
    assert jnp.allclose(out_bf16, ref, atol=5e-2, rtol=5e-2), "bf16 mismatch vs reference"

    print("KERNEL_OK")
</pallas_src>

<mosaic_0001>
module attributes {stable_mosaic.version = 11 : i64} {
  func.func @_disc_kernel_onehot(%arg0: i32, %arg1: memref<8x1xi32, #tpu.memory_space<vmem>>, %arg2: memref<8x16xf32, #tpu.memory_space<vmem>>, %arg3: memref<8x16xf32, #tpu.memory_space<vmem>>, %arg4: memref<16x128xf32, #tpu.memory_space<vmem>>, %arg5: memref<16x128xf32, #tpu.memory_space<vmem>>, %arg6: memref<8x384xf32, #tpu.memory_space<vmem>>, %arg7: memref<128x128xf32, #tpu.memory_space<vmem>>, %arg8: memref<128x128xf32, #tpu.memory_space<vmem>>, %arg9: memref<128x128xf32, #tpu.memory_space<vmem>>, %arg10: memref<1x128xf32, #tpu.memory_space<vmem>>, %arg11: memref<8x4xf32, #tpu.memory_space<vmem>>) attributes {dimension_semantics = [#tpu.dimension_semantics<parallel>], iteration_bounds = array<i64: 1>, scalar_prefetch = 0 : i64, scratch_operands = 0 : i64, tpu.core_type = #tpu.core_type<tc>, window_params = [{transform_indices = @transform_0, window_bounds = array<i64: 8, 1>}, {transform_indices = @transform_1, window_bounds = array<i64: 8, 16>}, {transform_indices = @transform_2, window_bounds = array<i64: 8, 16>}, {pipeline_mode = #tpu.pipeline_mode<synchronous>, transform_indices = @transform_3, window_bounds = array<i64: 16, 128>}, {pipeline_mode = #tpu.pipeline_mode<synchronous>, transform_indices = @transform_4, window_bounds = array<i64: 16, 128>}, {pipeline_mode = #tpu.pipeline_mode<synchronous>, transform_indices = @transform_5, window_bounds = array<i64: 8, 384>}, {pipeline_mode = #tpu.pipeline_mode<synchronous>, transform_indices = @transform_6, window_bounds = array<i64: 128, 128>}, {pipeline_mode = #tpu.pipeline_mode<synchronous>, transform_indices = @transform_7, window_bounds = array<i64: 128, 128>}, {pipeline_mode = #tpu.pipeline_mode<synchronous>, transform_indices = @transform_8, window_bounds = array<i64: 128, 128>}, {pipeline_mode = #tpu.pipeline_mode<synchronous>, transform_indices = @transform_9, window_bounds = array<i64: 1, 128>}, {transform_indices = @transform_10, window_bounds = array<i64: 8, 4>}]} {
    %0 = tpu.iota {dimensions = array<i32: 1>} : vector<8x8xi32>
    %c0 = arith.constant 0 : index
    %c0_0 = arith.constant 0 : index
    %1 = vector.load %arg1[%c0, %c0_0] : memref<8x1xi32, #tpu.memory_space<vmem>>, vector<8x1xi32>
    %2 = vector.broadcast %1 : vector<8x1xi32> to vector<8x8xi32>
    %3 = arith.cmpi eq, %0, %2 : vector<8x8xi32>
    %4 = arith.extui %3 : vector<8x8xi1> to vector<8x8xi32>
    %5 = arith.sitofp %4 : vector<8x8xi32> to vector<8x8xf32>
    %c0_1 = arith.constant 0 : index
    %c0_2 = arith.constant 0 : index
    %6 = vector.load %arg6[%c0_1, %c0_2] : memref<8x384xf32, #tpu.memory_space<vmem>>, vector<8x384xf32>
    %cst = arith.constant dense<0.000000e+00> : vector<8x384xf32>
    %7 = tpu.matmul %5, %6, %cst {dimension_numbers = #tpu.dot_dimension_numbers<[1], [0], [0], [1], [0, 0, 1, 1], [], []>} : vector<8x8xf32>, vector<8x384xf32>, vector<8x384xf32> -> vector<8x384xf32>
    %8 = vector.extract_strided_slice %7 {offsets = [0, 0], sizes = [8, 128], strides = [1, 1]} : vector<8x384xf32> to vector<8x128xf32>
    %9 = vector.extract_strided_slice %7 {offsets = [0, 128], sizes = [8, 128], strides = [1, 1]} : vector<8x384xf32> to vector<8x128xf32>
    %10 = vector.extract_strided_slice %7 {offsets = [0, 256], sizes = [8, 128], strides = [1, 1]} : vector<8x384xf32> to vector<8x128xf32>
    %c0_3 = arith.constant 0 : index
    %c0_4 = arith.constant 0 : index
    %11 = vector.load %arg2[%c0_3, %c0_4] : memref<8x16xf32, #tpu.memory_space<vmem>>, vector<8x16xf32>
    %c0_5 = arith.constant 0 : index
    %c0_6 = arith.constant 0 : index
    %12 = vector.load %arg4[%c0_5, %c0_6] : memref<16x128xf32, #tpu.memory_space<vmem>>, vector<16x128xf32>
    %cst_7 = arith.constant dense<0.000000e+00> : vector<8x128xf32>
    %13 = tpu.matmul %11, %12, %cst_7 {dimension_numbers = #tpu.dot_dimension_numbers<[1], [0], [0], [1], [0, 0, 1, 1], [], []>} : vector<8x16xf32>, vector<16x128xf32>, vector<8x128xf32> -> vector<8x128xf32>
    %c0_8 = arith.constant 0 : index
    %c0_9 = arith.constant 0 : index
    %14 = vector.load %arg3[%c0_8, %c0_9] : memref<8x16xf32, #tpu.memory_space<vmem>>, vector<8x16xf32>
    %c0_10 = arith.constant 0 : index
    %c0_11 = arith.constant 0 : index
    %15 = vector.load %arg5[%c0_10, %c0_11] : memref<16x128xf32, #tpu.memory_space<vmem>>, vector<16x128xf32>
    %cst_12 = arith.constant dense<0.000000e+00> : vector<8x128xf32>
    %16 = tpu.matmul %14, %15, %cst_12 {dimension_numbers = #tpu.dot_dimension_numbers<[1], [0], [0], [1], [0, 0, 1, 1], [], []>} : vector<8x16xf32>, vector<16x128xf32>, vector<8x128xf32> -> vector<8x128xf32>
    %17 = arith.addf %13, %16 : vector<8x128xf32>
    %18 = arith.addf %17, %8 : vector<8x128xf32>
    %cst_13 = arith.constant 0.000000e+00 : f32
    %19 = vector.broadcast %cst_13 : f32 to vector<8x128xf32>
    %20 = arith.maximumf %18, %19 : vector<8x128xf32>
    %c0_14 = arith.constant 0 : index
    %c0_15 = arith.constant 0 : index
    %21 = vector.load %arg7[%c0_14, %c0_15] : memref<128x128xf32, #tpu.memory_space<vmem>>, vector<128x128xf32>
    %cst_16 = arith.constant dense<0.000000e+00> : vector<8x128xf32>
    %22 = tpu.matmul %20, %21, %cst_16 {dimension_numbers = #tpu.dot_dimension_numbers<[1], [0], [0], [1], [0, 0, 1, 1], [], []>} : vector<8x128xf32>, vector<128x128xf32>, vector<8x128xf32> -> vector<8x128xf32>
    %23 = arith.addf %22, %9 : vector<8x128xf32>
    %cst_17 = arith.constant 0.000000e+00 : f32
    %24 = vector.broadcast %cst_17 : f32 to vector<8x128xf32>
    %25 = arith.maximumf %23, %24 : vector<8x128xf32>
    %c0_18 = arith.constant 0 : index
    %c0_19 = arith.constant 0 : index
    %26 = vector.load %arg8[%c0_18, %c0_19] : memref<128x128xf32, #tpu.memory_space<vmem>>, vector<128x128xf32>
    %cst_20 = arith.constant dense<0.000000e+00> : vector<8x128xf32>
    %27 = tpu.matmul %25, %26, %cst_20 {dimension_numbers = #tpu.dot_dimension_numbers<[1], [0], [0], [1], [0, 0, 1, 1], [], []>} : vector<8x128xf32>, vector<128x128xf32>, vector<8x128xf32> -> vector<8x128xf32>
    %28 = arith.addf %27, %10 : vector<8x128xf32>
    %cst_21 = arith.constant 0.000000e+00 : f32
    %29 = vector.broadcast %cst_21 : f32 to vector<8x128xf32>
    %30 = arith.maximumf %28, %29 : vector<8x128xf32>
    %c0_22 = arith.constant 0 : index
    %c0_23 = arith.constant 0 : index
    %31 = vector.load %arg9[%c0_22, %c0_23] : memref<128x128xf32, #tpu.memory_space<vmem>>, vector<128x128xf32>
    %cst_24 = arith.constant dense<0.000000e+00> : vector<8x128xf32>
    %32 = tpu.matmul %30, %31, %cst_24 {dimension_numbers = #tpu.dot_dimension_numbers<[1], [0], [0], [1], [0, 0, 1, 1], [], []>} : vector<8x128xf32>, vector<128x128xf32>, vector<8x128xf32> -> vector<8x128xf32>
    %c0_25 = arith.constant 0 : index
    %c0_26 = arith.constant 0 : index
    %33 = vector.load %arg10[%c0_25, %c0_26] : memref<1x128xf32, #tpu.memory_space<vmem>>, vector<1x128xf32>
    %34 = vector.broadcast %33 : vector<1x128xf32> to vector<8x128xf32>
    %35 = arith.addf %32, %34 : vector<8x128xf32>
    %36 = vector.extract_strided_slice %35 {offsets = [0, 0], sizes = [8, 4], strides = [1, 1]} : vector<8x128xf32> to vector<8x4xf32>
    %37 = arith.negf %36 : vector<8x4xf32>
    %38 = math.exp %37 : vector<8x4xf32>
    %cst_27 = arith.constant 1.000000e+00 : f32
    %39 = vector.broadcast %cst_27 : f32 to vector<8x4xf32>
    %40 = arith.addf %39, %38 : vector<8x4xf32>
    %41 = arith.divf %39, %40 : vector<8x4xf32>
    %c0_28 = arith.constant 0 : index
    %c0_29 = arith.constant 0 : index
    %42 = vector.load %arg11[%c0_28, %c0_29] : memref<8x4xf32, #tpu.memory_space<vmem>>, vector<8x4xf32>
    tpu.vector_store %arg11[%c0_28, %c0_29], %41 {strides = array<i32>} : memref<8x4xf32, #tpu.memory_space<vmem>>, vector<8x4xf32>,
    return
  }
  func.func @transform_0(%arg0: i32) -> (i32, i32) {
    %c0_i32 = arith.constant 0 : i32
    %c0_i32_0 = arith.constant 0 : i32
    return %arg0, %c0_i32 : i32, i32
  }
  func.func @transform_1(%arg0: i32) -> (i32, i32) {
    %c0_i32 = arith.constant 0 : i32
    %c0_i32_0 = arith.constant 0 : i32
    return %arg0, %c0_i32 : i32, i32
  }
  func.func @transform_2(%arg0: i32) -> (i32, i32) {
    %c0_i32 = arith.constant 0 : i32
    %c0_i32_0 = arith.constant 0 : i32
    return %arg0, %c0_i32 : i32, i32
  }
  func.func @transform_3(%arg0: i32) -> (i32, i32) {
    %c0_i32 = arith.constant 0 : i32
    %c0_i32_0 = arith.constant 0 : i32
    %c0_i32_1 = arith.constant 0 : i32
    return %c0_i32, %c0_i32_0 : i32, i32
  }
  func.func @transform_4(%arg0: i32) -> (i32, i32) {
    %c0_i32 = arith.constant 0 : i32
    %c0_i32_0 = arith.constant 0 : i32
    %c0_i32_1 = arith.constant 0 : i32
    return %c0_i32, %c0_i32_0 : i32, i32
  }
  func.func @transform_5(%arg0: i32) -> (i32, i32) {
    %c0_i32 = arith.constant 0 : i32
    %c0_i32_0 = arith.constant 0 : i32
    %c0_i32_1 = arith.constant 0 : i32
    return %c0_i32, %c0_i32_0 : i32, i32
  }
  func.func @transform_6(%arg0: i32) -> (i32, i32) {
    %c0_i32 = arith.constant 0 : i32
    %c0_i32_0 = arith.constant 0 : i32
    %c0_i32_1 = arith.constant 0 : i32
    return %c0_i32, %c0_i32_0 : i32, i32
  }
  func.func @transform_7(%arg0: i32) -> (i32, i32) {
    %c0_i32 = arith.constant 0 : i32
    %c0_i32_0 = arith.constant 0 : i32
    %c0_i32_1 = arith.constant 0 : i32
    return %c0_i32, %c0_i32_0 : i32, i32
  }
  func.func @transform_8(%arg0: i32) -> (i32, i32) {
    %c0_i32 = arith.constant 0 : i32
    %c0_i32_0 = arith.constant 0 : i32
    %c0_i32_1 = arith.constant 0 : i32
    return %c0_i32, %c0_i32_0 : i32, i32
  }
  func.func @transform_9(%arg0: i32) -> (i32, i32) {
    %c0_i32 = arith.constant 0 : i32
    %c0_i32_0 = arith.constant 0 : i32
    %c0_i32_1 = arith.constant 0 : i32
    return %c0_i32, %c0_i32_0 : i32, i32
  }
  func.func @transform_10(%arg0: i32) -> (i32, i32) {
    %c0_i32 = arith.constant 0 : i32
    %c0_i32_0 = arith.constant 0 : i32
    return %arg0, %c0_i32 : i32, i32
  }
}

</mosaic_0001>

<bundles_post_ra>
// kernel: discriminator_noise_x.1
= control target key start
LH: loop header
LB: loop body
LE: loop exit
PB: predicated region body
PF: predicated region fallthrough
CT: control target
= control target key end

     0   :  { %15 = vsyncpa [#allocation3], 0  ;;  %s1259_s0 = inlined_call_operand.vmem [shape: s32[8,1], index: 0, kind: input, shape index: {}]   ;;  %s1260_s1 = inlined_call_operand.hbm [shape: f32[8,16], index: 1, kind: input, shape index: {}]   ;;  %s1261_s2 = inlined_call_operand.hbm [shape: f32[8,16], index: 2, kind: input, shape index: {}]   ;;  %s1262_s3 = inlined_call_operand.vmem [shape: f32[16,128], index: 3, kind: input, shape index: {}]   ;;  %s1263_s4 = inlined_call_operand.hbm [shape: f32[16,128], index: 4, kind: input, shape index: {}]   ;;  %s1264_s5 = inlined_call_operand.hbm [shape: f32[8,384], index: 5, kind: input, shape index: {}]   ;;  %s1265_s6 = inlined_call_operand.hbm [shape: f32[128,128], index: 6, kind: input, shape index: {}]   ;;  %s1266_s7 = inlined_call_operand.hbm [shape: f32[128,128], index: 7, kind: input, shape index: {}]   ;;  %s1267_s8 = inlined_call_operand.hbm [shape: f32[128,128], index: 8, kind: input, shape index: {}]   ;;  %s1268_s9 = inlined_call_operand.vmem [shape: f32[1,128], index: 9, kind: input, shape index: {}]   ;;  %s1269_s10 = inlined_call_operand.vmem [shape: f32[8,4], index: 10, kind: output, shape index: {}]  }
   0x1   :  { %16 = vsyncpa [#allocation5], 0 }
   0x2   :  { %17 = vsyncpa [#allocation8], 0 }
   0x3   :  { %18 = vsyncpa [#allocation11], 0  ;;  %s1074_s13 = smov [#allocation4]   ;;  %s1075_s15 = smov [#allocation7]  }
   0x4   :  { %s37_s14 = sshll.u32 %s1074_s13, 4  ;;  %s61_s16 = sshll.u32 %s1075_s15, 4  ;;  %s38_s14 = int_to_ptr.vmem [resolvable:$true] %s37_s14  ;;  %s62_s16 = int_to_ptr.vmem [resolvable:$true] %s61_s16 }
   0x5   :  { %s934_s17 = scalar_lea.vmem %s38_s14, 128  ;;  %p939_p1 = scmp.lt.s32.totalorder %s38_s14, %s38_s14 }
   0x6   :  { %p935_p0 = scmp.ne.s32.totalorder %s38_s14, %s934_s17  ;;  %p940_p2 = scmp.lt.s32.totalorder %s934_s17, %s934_s17 }
   0x8   :  { %p941_p3 = por %p940_p2, %p939_p1 }
   0xa   :  { %p942_p4 = pnand %p941_p3, %p935_p0 }
   0xc   :  { %945 = shalt.err (!%p942_p4)
}
   0xd   :  { %40 = dma.hbm_to_vmem [thread:$0]  %s1261_s2, 128, %s38_s14, [#allocation5]  }
   0xe   :  { %s954_s20 = scalar_lea.vmem %s62_s16, 384  ;;  %p959_p6 = scmp.lt.s32.totalorder %s62_s16, %s62_s16 }
   0xf   :  { %p955_p5 = scmp.ne.s32.totalorder %s62_s16, %s954_s20  ;;  %p960_p7 = scmp.lt.s32.totalorder %s954_s20, %s954_s20 }
  0x11   :  { %p961_p8 = por %p960_p7, %p959_p6 }
  0x13   :  { %p962_p9 = pnand %p961_p8, %p955_p5 }
  0x15   :  { %965 = shalt.err (!%p962_p9)
}
  0x16   :  { %64 = dma.hbm_to_vmem [thread:$0]  %s1264_s5, 384, %s62_s16, [#allocation8]  }
  0x17   :  { %s1076_s23 = smov [#allocation10]   ;;  %s1077_s25 = smov [#allocation2]  }
  0x18   :  { %s82_s24 = sshll.u32 %s1076_s23, 4  ;;  %s27_s26 = sshll.u32 %s1077_s25, 4  ;;  %s83_s24 = int_to_ptr.vmem [resolvable:$true] %s82_s24  ;;  %s28_s26 = int_to_ptr.vmem [resolvable:$true] %s27_s26 }
  0x19   :  { %s974_s27 = scalar_lea.vmem %s83_s24, 2048  ;;  %p979_p11 = scmp.lt.s32.totalorder %s83_s24, %s83_s24 }
  0x1a   :  { %p975_p10 = scmp.ne.s32.totalorder %s83_s24, %s974_s27  ;;  %p980_p12 = scmp.lt.s32.totalorder %s974_s27, %s974_s27 }
  0x1c   :  { %p981_p13 = por %p980_p12, %p979_p11 }
  0x1e   :  { %p982_p0 = pnand %p981_p13, %p975_p10 }
  0x20   :  { %985 = shalt.err (!%p982_p0)
}
  0x21   :  { %s1078_s2 = smov 128   ;;  %s1079_s28 = smov 8  }
  0x22   :  { %88 = dma.hbm_to_vmem [thread:$0]  %s1266_s7, 2048, %s83_s24, [#allocation11], %s1078_s2, %s1078_s2, %s1079_s28  }
  0x23   :  { %s994_s30 = scalar_lea.vmem %s28_s26, 128  ;;  %p999_p2 = scmp.lt.s32.totalorder %s28_s26, %s28_s26 }
  0x24   :  { %p995_p1 = scmp.ne.s32.totalorder %s28_s26, %s994_s30  ;;  %p1000_p3 = scmp.lt.s32.totalorder %s994_s30, %s994_s30 }
  0x26   :  { %p1001_p4 = por %p1000_p3, %p999_p2 }
  0x28   :  { %p1002_p5 = pnand %p1001_p4, %p995_p1 }
  0x2a   :  { %1005 = shalt.err (!%p1002_p5)
}
  0x2b   :  { %30 = dma.hbm_to_vmem [thread:$0]  %s1260_s1, 128, %s28_s26, [#allocation3]  }
  0x2c   :  { %s1080_s13 = smov [#allocation6]   ;;  %s1081_s15 = smov [#allocation9]  }
  0x2d   :  { %s48_s14 = sshll.u32 %s1080_s13, 4  ;;  %s70_s16 = sshll.u32 %s1081_s15, 4  ;;  %s49_s14 = int_to_ptr.vmem [resolvable:$true] %s48_s14  ;;  %s71_s16 = int_to_ptr.vmem [resolvable:$true] %s70_s16 }
  0x2e   :  { %s1014_s17 = scalar_lea.vmem %s49_s14, 256  ;;  %p1019_p7 = scmp.lt.s32.totalorder %s49_s14, %s49_s14 }
  0x2f   :  { %p1015_p6 = scmp.ne.s32.totalorder %s49_s14, %s1014_s17  ;;  %p1020_p8 = scmp.lt.s32.totalorder %s1014_s17, %s1014_s17 }
  0x31   :  { %p1021_p9 = por %p1020_p8, %p1019_p7 }
  0x33   :  { %p1022_p10 = pnand %p1021_p9, %p1015_p6 }
  0x35   :  { %1025 = shalt.err (!%p1022_p10)
}
  0x36   :  { %54 = dma.hbm_to_vmem [thread:$0]  %s1263_s4, 256, %s49_s14, [#allocation5], %s1078_s2, %s1078_s2, %s1079_s28  }
  0x37   :  { %s1034_s1 = scalar_lea.vmem %s71_s16, 2048  ;;  %p1039_p12 = scmp.lt.s32.totalorder %s71_s16, %s71_s16 }
  0x38   :  { %p1035_p11 = scmp.ne.s32.totalorder %s71_s16, %s1034_s1  ;;  %p1040_p13 = scmp.lt.s32.totalorder %s1034_s1, %s1034_s1 }
  0x3a   :  { %p1041_p0 = por %p1040_p13, %p1039_p12 }
  0x3c   :  { %p1042_p1 = pnand %p1041_p0, %p1035_p11 }
  0x3e   :  { %1045 = shalt.err (!%p1042_p1)
}
  0x3f   :  { %76 = dma.hbm_to_vmem [thread:$0]  %s1265_s6, 2048, %s71_s16, [#allocation8], %s1078_s2, %s1078_s2, %s1079_s28  }
  0x40   :  { %s1082_s21 = smov [#allocation12]  }
  0x41   :  { %s94_s22 = sshll.u32 %s1082_s21, 4  ;;  %s95_s22 = int_to_ptr.vmem [resolvable:$true] %s94_s22 }
  0x42   :  { %s1054_s23 = scalar_lea.vmem %s95_s22, 2048  ;;  %p1059_p3 = scmp.lt.s32.totalorder %s95_s22, %s95_s22 }
  0x43   :  { %p1055_p2 = scmp.ne.s32.totalorder %s95_s22, %s1054_s23  ;;  %p1060_p4 = scmp.lt.s32.totalorder %s1054_s23, %s1054_s23 }
  0x45   :  { %p1061_p5 = por %p1060_p4, %p1059_p3 }
  0x47   :  { %p1062_p6 = pnand %p1061_p5, %p1055_p2 }
  0x49   :  { %1065 = shalt.err (!%p1062_p6)
}
  0x4a   :  { %100 = dma.hbm_to_vmem [thread:$0]  %s1267_s8, 2048, %s95_s22, [#allocation11], %s1078_s2, %s1078_s2, %s1079_s28  }
  0x4b   :  { %1066 = dma.done.wait [#allocation3], 128  }
  0x4c   :  { %1067 = vsyncadd [#allocation3], 4294967168 }
  0x4d   :  { %1068 = dma.done.wait [#allocation5], 384  }
  0x4e   :  { %1069 = vsyncadd [#allocation5], 4294966912 }
  0x4f   :  { %1070 = dma.done.wait [#allocation8], 2432  }
  0x50   :  { %1071 = vsyncadd [#allocation8], 4294964864 }
  0x51   :  { %1072 = dma.done.wait [#allocation11], 4096  }
  0x52   :  { %1073 = vsyncadd [#allocation11], 4294963200  ;;  %v1083_v0 = vmov 0   ;;  %v1084_v1 = vmov 0.0   ;;  %v126_v2 = vld [vmem:[%s1259_s0] sm:$0xff]  ;;  %v134_v3 = vld [vmem:[#allocation7 + $0x8] sm:$0xff]  ;;  %v124_v11 = vlaneseq }
  0x53   :  { %921 = vset.pattern.permute.xlu0 %v1083_v0  ;;  %204 = vmatprep.mubr.f32.mxu1 %v1084_v1  ;;  %v133_v4 = vld [vmem:[#allocation7] sm:$0xff]  ;;  %vm1085_vm0 = vmmov 0   ;;  %v451_v5 = vld [vmem:[#allocation9 + $0x78] sm:$0xff]  ;;  %v450_v6 = vld [vmem:[#allocation9 + $0x70] sm:$0xff]  ;;  %vm136_vm1 = vcmask 64512   ;;  %vm287_vm3 = vcmask 130048  }
  0x54   :  { %804 = vmatprep.subr.mxu0 %v1084_v1  ;;  %128 = vperm.xlu0 %921, %v126_v2   ;;  %v449_v7 = vld [vmem:[#allocation9 + $0x68] sm:$0xff]  ;;  %v448_v8 = vld [vmem:[#allocation9 + $0x60] sm:$0xff]  ;;  %v447_v9 = vld [vmem:[#allocation9 + $0x58] sm:$0xff]  ;;  %v125_v12 = vand.u32 127, %v124_v11  ;;  %vm709_vm4 = vcmask 31744  }
  0x55   :  { %170 = vmatprep.subr.mxu1 %v134_v3  ;;  %836 = vmatprep.mubr.msk.f32.mxu0 %vm1085_vm0, %v1084_v1  ;;  %v446_v10 = vld [vmem:[#allocation9 + $0x50] sm:$0xff]  ;;  %v135_v14 = vld [vmem:[#allocation7 + $0x10] sm:$0xff]  ;;  %v286_v16 = vld [vmem:[#allocation6 + $0x8] sm:$0xff] }
  0x56   :  { %171 = vmatpush1.msra.mxu1 %v133_v4  ;;  %805 = vmatpush3.msra.mxu0 %v451_v5  ;;  %v285_v17 = vld [vmem:[#allocation6] sm:$0xff]  ;;  %v284_v18 = vld [vmem:[#allocation4] sm:$0xff]  ;;  %v282_v20 = vld [vmem:[%s1262_s3] sm:$0xff] }
  0x57   :  { %785 = vmatprep.subr.mxu1 %v1084_v1  ;;  %806 = vmatprep.subr.mxu0 %v1084_v1  ;;  %v283_v19 = vld [vmem:[%s1262_s3 + $0x8] sm:$0xff]  ;;  %v281_v21 = vld [vmem:[#allocation2] sm:$0xff]  ;;  %v444_v23 = vld [vmem:[#allocation9 + $0x40] sm:$0xff] }
  0x58   :  { %807 = vmatpush3.msra.mxu0 %v450_v6  ;;  %v445_v22 = vld [vmem:[#allocation9 + $0x48] sm:$0xff]  ;;  %v443_v24 = vld [vmem:[#allocation9 + $0x38] sm:$0xff]  ;;  %v442_v25 = vld [vmem:[#allocation9 + $0x30] sm:$0xff] }
  0x59   :  { %808 = vmatprep.subr.mxu0 %v1084_v1  ;;  %v441_v26 = vld [vmem:[#allocation9 + $0x28] sm:$0xff]  ;;  %v440_v27 = vld [vmem:[#allocation9 + $0x20] sm:$0xff]  ;;  %v439_v28 = vld [vmem:[#allocation9 + $0x18] sm:$0xff] }
  0x5a   :  { %809 = vmatpush3.msra.mxu0 %v449_v7  ;;  %v438_v29 = vld [vmem:[#allocation9 + $0x10] sm:$0xff]  ;;  %v437_v30 = vld [vmem:[#allocation9 + $0x8] sm:$0xff]  ;;  %v436_v31 = vld [vmem:[#allocation9] sm:$0xff] }
  0x5b   :  { %810 = vmatprep.subr.mxu0 %v1084_v1  ;;  %v538_v32 = vld [vmem:[#allocation10 + $0x78] sm:$0xff]  ;;  %v537_v33 = vld [vmem:[#allocation10 + $0x70] sm:$0xff]  ;;  %v536_v34 = vld [vmem:[#allocation10 + $0x68] sm:$0xff] }
  0x5c   :  { %811 = vmatpush3.msra.mxu0 %v448_v8  ;;  %v535_v35 = vld [vmem:[#allocation10 + $0x60] sm:$0xff]  ;;  %v534_v36 = vld [vmem:[#allocation10 + $0x58] sm:$0xff]  ;;  %v533_v37 = vld [vmem:[#allocation10 + $0x50] sm:$0xff] }
  0x5d   :  { %812 = vmatprep.subr.mxu0 %v1084_v1  ;;  %v532_v38 = vld [vmem:[#allocation10 + $0x48] sm:$0xff]  ;;  %v531_v39 = vld [vmem:[#allocation10 + $0x40] sm:$0xff]  ;;  %v530_v40 = vld [vmem:[#allocation10 + $0x38] sm:$0xff] }
  0x5e   :  { %813 = vmatpush3.msra.mxu0 %v447_v9  ;;  %v529_v41 = vld [vmem:[#allocation10 + $0x30] sm:$0xff]  ;;  %v528_v42 = vld [vmem:[#allocation10 + $0x28] sm:$0xff]  ;;  %v527_v43 = vld [vmem:[#allocation10 + $0x20] sm:$0xff] }
  0x5f   :  { %814 = vmatprep.subr.mxu0 %v1084_v1  ;;  %v526_v44 = vld [vmem:[#allocation10 + $0x18] sm:$0xff]  ;;  %v525_v56 = vld [vmem:[#allocation10 + $0x10] sm:$0xff]  ;;  %v524_v57 = vld [vmem:[#allocation10 + $0x8] sm:$0xff] }
  0x60   :  { %815 = vmatpush3.msra.mxu0 %v446_v10  ;;  %v523_v58 = vld [vmem:[#allocation10] sm:$0xff]  ;;  %v625_v59 = vld [vmem:[#allocation12 + $0x78] sm:$0xff]  ;;  %v624_v60 = vld [vmem:[#allocation12 + $0x70] sm:$0xff] }
  0x61   :  { %816 = vmatprep.subr.mxu0 %v1084_v1  ;;  %v623_v61 = vld [vmem:[#allocation12 + $0x68] sm:$0xff]  ;;  %v622_v62 = vld [vmem:[#allocation12 + $0x60] sm:$0xff]  ;;  %v621_v63 = vld [vmem:[#allocation12 + $0x58] sm:$0xff] }
  0x62   :  { %817 = vmatpush3.msra.mxu0 %v445_v22  ;;  %v620_v0 = vld [vmem:[#allocation12 + $0x50] sm:$0xff]  ;;  %v619_v2 = vld [vmem:[#allocation12 + $0x48] sm:$0xff]  ;;  %v618_v3 = vld [vmem:[#allocation12 + $0x40] sm:$0xff] }
  0x63   :  { %818 = vmatprep.subr.mxu0 %v1084_v1  ;;  %v617_v4 = vld [vmem:[#allocation12 + $0x38] sm:$0xff]  ;;  %v616_v5 = vld [vmem:[#allocation12 + $0x30] sm:$0xff]  ;;  %v615_v6 = vld [vmem:[#allocation12 + $0x28] sm:$0xff] }
  0x64   :  { %819 = vmatpush3.msra.mxu0 %v444_v23  ;;  %v614_v7 = vld [vmem:[#allocation12 + $0x20] sm:$0xff]  ;;  %v613_v8 = vld [vmem:[#allocation12 + $0x18] sm:$0xff] }
  0x65   :  { %820 = vmatprep.subr.mxu0 %v1084_v1 }
  0x66   :  { %821 = vmatpush3.msra.mxu0 %v443_v24 }
  0x67   :  { %822 = vmatprep.subr.mxu0 %v1084_v1 }
  0x68   :  { %823 = vmatpush3.msra.mxu0 %v442_v25 }
  0x69   :  { %824 = vmatprep.subr.mxu0 %v1084_v1 }
  0x6a   :  { %825 = vmatpush3.msra.mxu0 %v441_v26 }
  0x6b   :  { %826 = vmatprep.subr.mxu0 %v1084_v1 }
  0x6c   :  { %827 = vmatpush3.msra.mxu0 %v440_v27 }
  0x6d   :  { %828 = vmatprep.subr.mxu0 %v1084_v1 }
  0x6e   :  { %829 = vmatpush3.msra.mxu0 %v439_v28 }
  0x6f   :  { %830 = vmatprep.subr.mxu0 %v1084_v1 }
  0x70   :  { %831 = vmatpush3.msra.mxu0 %v438_v29 }
  0x71   :  { %832 = vmatprep.subr.mxu0 %v1084_v1 }
  0x72   :  { %833 = vmatpush3.msra.mxu0 %v437_v30 }
  0x73   :  { %834 = vmatprep.subr.mxu0 %v1084_v1 }
  0x74   :  { %835 = vmatpush3.msra.mxu0 %v436_v31 }
  0x75   :  { %874 = vmatprep.subr.mxu0 %v1084_v1 }
  0xcf   :  { %v129_v13 = vpop.permute.xlu0 %128 }
  0xd0   :  { %vm130_vm2 = vcmp.eq.s32.totalorder %v125_v12, %v129_v13  ;;  %v612_v13 = vld [vmem:[#allocation12 + $0x10] sm:$0xff] }
  0xd1   :  { %v719_v15 = vsel %vm130_vm2, 1.0, %v1084_v1 }
  0xd2   :  { %720 = vmatmul.mubr.msk.f32.vlgmr.msra.gmra.mxu1 %vm136_vm1, %v719_v15 }
  0xd3   :  { %786 = vmatpush3.msra.mxu1 %v135_v14  ;;  %787 = vmatprep.mubr.msk.f32.mxu1 %vm1085_vm0, %v1084_v1  ;;  %v611_v14 = vld [vmem:[#allocation12 + $0x8] sm:$0xff] }
  0xd4   :  { %790 = vmatprep.subr.mxu1 %v1084_v1 }
  0xd6   :  { %788 = vmatmul.mubr.msk.f32.vlgmr.msra.gmra.mxu1 %vm136_vm1, %v719_v15  ;;  %v610_v15 = vld [vmem:[#allocation12] sm:$0xff] }
  0xd7   :  { %791 = vmatpush3.msra.mxu1 %v286_v16  ;;  %794 = vmatprep.mubr.msk.f32.mxu1 %vm1085_vm0, %v1084_v1 }
  0xd8   :  { %792 = vmatprep.subr.mxu1 %v1084_v1 }
  0xd9   :  { %793 = vmatpush3.msra.mxu1 %v285_v17 }
  0xda   :  { %797 = vmatprep.subr.mxu1 %v1084_v1  ;;  %795 = vmatmul.mubr.msk.f32.vlgmr.msra.gmra.mxu1 %vm287_vm3, %v284_v18 }
  0xdb   :  { %798 = vmatpush3.msra.mxu1 %v283_v19  ;;  %801 = vmatprep.mubr.msk.f32.mxu1 %vm1085_vm0, %v1084_v1 }
  0xdc   :  { %799 = vmatprep.subr.mxu1 %v1084_v1 }
  0xdd   :  { %800 = vmatpush3.msra.mxu1 %v282_v20  ;;  %v724_v20 = vld [vmem:[%s1268_s9] ss:$0 sm:$0xff] }
  0xde   :  { %802 = vmatmul.mubr.msk.f32.vlgmr.msra.gmra.mxu1 %vm287_vm3, %v281_v21  ;;  %839 = vmatprep.subr.mxu1 %v1084_v1 }
  0xdf   :  { %871 = vmatprep.mubr.msk.f32.mxu1 %vm1085_vm0, %v1084_v1  ;;  %840 = vmatpush3.msra.mxu1 %v538_v32 }
  0xe0   :  { %841 = vmatprep.subr.mxu1 %v1084_v1 }
  0xe1   :  { %842 = vmatpush3.msra.mxu1 %v537_v33 }
  0xe2   :  { %843 = vmatprep.subr.mxu1 %v1084_v1 }
  0xe3   :  { %844 = vmatpush3.msra.mxu1 %v536_v34 }
  0xe4   :  { %845 = vmatprep.subr.mxu1 %v1084_v1 }
  0xe5   :  { %846 = vmatpush3.msra.mxu1 %v535_v35 }
  0xe6   :  { %847 = vmatprep.subr.mxu1 %v1084_v1 }
  0xe7   :  { %848 = vmatpush3.msra.mxu1 %v534_v36 }
  0xe8   :  { %849 = vmatprep.subr.mxu1 %v1084_v1 }
  0xe9   :  { %850 = vmatpush3.msra.mxu1 %v533_v37 }
  0xea   :  { %851 = vmatprep.subr.mxu1 %v1084_v1 }
  0xeb   :  { %852 = vmatpush3.msra.mxu1 %v532_v38 }
  0xec   :  { %853 = vmatprep.subr.mxu1 %v1084_v1 }
  0xed   :  { %854 = vmatpush3.msra.mxu1 %v531_v39 }
  0xee   :  { %855 = vmatprep.subr.mxu1 %v1084_v1 }
  0xef   :  { %856 = vmatpush3.msra.mxu1 %v530_v40 }
  0xf0   :  { %857 = vmatprep.subr.mxu1 %v1084_v1 }
  0xf1   :  { %858 = vmatpush3.msra.mxu1 %v529_v41 }
  0xf2   :  { %859 = vmatprep.subr.mxu1 %v1084_v1 }
  0xf3   :  { %860 = vmatpush3.msra.mxu1 %v528_v42 }
  0xf4   :  { %861 = vmatprep.subr.mxu1 %v1084_v1 }
  0xf5   :  { %862 = vmatpush3.msra.mxu1 %v527_v43 }
  0xf6   :  { %863 = vmatprep.subr.mxu1 %v1084_v1 }
  0xf7   :  { %864 = vmatpush3.msra.mxu1 %v526_v44 }
  0xf8   :  { %865 = vmatprep.subr.mxu1 %v1084_v1 }
  0xf9   :  { %866 = vmatpush3.msra.mxu1 %v525_v56 }
  0xfa   :  { %867 = vmatprep.subr.mxu1 %v1084_v1 }
  0xfb   :  { %868 = vmatpush3.msra.mxu1 %v524_v57 }
  0xfc   :  { %869 = vmatprep.subr.mxu1 %v1084_v1 }
  0xfd   :  { %870 = vmatpush3.msra.mxu1 %v523_v58 }
 0x192   :  { %v206_v45 = vpop.f32.mrf.mxu1 }
 0x194   :  { %v208_v46 = vpop.f32.mrf.mxu1 }
 0x196   :  { %v1231_v47 = vpop.f32.mrf.mxu1 }
 0x198   :  { %v789_v48 = vpop.f32.mrf.mxu1 }
 0x19a   :  { %v357_v49 = vpop.f32.mrf.mxu1 }
 0x19c   :  { %v796_v50 = vpop.f32.mrf.mxu1 }
 0x19e   :  { %v430_v51 = vpop.f32.mrf.mxu1 }
 0x19f   :  { %v431_v52 = vadd.f32 %v430_v51, %v357_v49 }
 0x1a0   :  { %v803_v53 = vpop.f32.mrf.mxu1 }
 0x1a1   :  { %v434_v54 = vadd.f32 %v431_v52, %v206_v45 }
 0x1a3   :  { %v435_v55 = vmax.f32 %v434_v54, 0.0 }
 0x1a5   :  { %837 = vmatmul.mubr.f32.vlgmr.msra.gmra.mxu0 %v435_v55 }
 0x1a6   :  { %906 = vmatprep.mubr.msk.f32.mxu0 %vm1085_vm0, %v1084_v1  ;;  %875 = vmatpush3.msra.mxu0 %v625_v59 }
 0x1a7   :  { %876 = vmatprep.subr.mxu0 %v1084_v1 }
 0x1a8   :  { %877 = vmatpush3.msra.mxu0 %v624_v60 }
 0x1a9   :  { %878 = vmatprep.subr.mxu0 %v1084_v1 }
 0x1aa   :  { %879 = vmatpush3.msra.mxu0 %v623_v61 }
 0x1ab   :  { %880 = vmatprep.subr.mxu0 %v1084_v1 }
 0x1ac   :  { %881 = vmatpush3.msra.mxu0 %v622_v62 }
 0x1ad   :  { %882 = vmatprep.subr.mxu0 %v1084_v1 }
 0x1ae   :  { %883 = vmatpush3.msra.mxu0 %v621_v63 }
 0x1af   :  { %884 = vmatprep.subr.mxu0 %v1084_v1 }
 0x1b0   :  { %885 = vmatpush3.msra.mxu0 %v620_v0 }
 0x1b1   :  { %886 = vmatprep.subr.mxu0 %v1084_v1 }
 0x1b2   :  { %887 = vmatpush3.msra.mxu0 %v619_v2 }
 0x1b3   :  { %888 = vmatprep.subr.mxu0 %v1084_v1 }
 0x1b4   :  { %889 = vmatpush3.msra.mxu0 %v618_v3 }
 0x1b5   :  { %890 = vmatprep.subr.mxu0 %v1084_v1 }
 0x1b6   :  { %891 = vmatpush3.msra.mxu0 %v617_v4 }
 0x1b7   :  { %892 = vmatprep.subr.mxu0 %v1084_v1 }
 0x1b8   :  { %893 = vmatpush3.msra.mxu0 %v616_v5 }
 0x1b9   :  { %894 = vmatprep.subr.mxu0 %v1084_v1 }
 0x1ba   :  { %895 = vmatpush3.msra.mxu0 %v615_v6 }
 0x1bb   :  { %896 = vmatprep.subr.mxu0 %v1084_v1 }
 0x1bc   :  { %897 = vmatpush3.msra.mxu0 %v614_v7 }
 0x1bd   :  { %898 = vmatprep.subr.mxu0 %v1084_v1 }
 0x1be   :  { %899 = vmatpush3.msra.mxu0 %v613_v8 }
 0x1bf   :  { %900 = vmatprep.subr.mxu0 %v1084_v1 }
 0x1c0   :  { %901 = vmatpush3.msra.mxu0 %v612_v13 }
 0x1c1   :  { %902 = vmatprep.subr.mxu0 %v1084_v1 }
 0x1c2   :  { %903 = vmatpush3.msra.mxu0 %v611_v14 }
 0x1c3   :  { %904 = vmatprep.subr.mxu0 %v1084_v1 }
 0x1c4   :  { %905 = vmatpush3.msra.mxu0 %v610_v15 }
 0x265   :  { %v518_v9 = vpop.f32.mrf.mxu0 }
 0x266   :  { %v519_v10 = vadd.f32 %v518_v9, %v208_v46 }
 0x267   :  { %v838_v11 = vpop.f32.mrf.mxu0 }
 0x268   :  { %v522_v12 = vmax.f32 %v519_v10, 0.0 }
 0x26a   :  { %872 = vmatmul.mubr.f32.vlgmr.msra.gmra.mxu1 %v522_v12 }
 0x32a   :  { %v605_v16 = vpop.f32.mrf.mxu1 }
 0x32b   :  { %v606_v17 = vadd.f32 %v605_v16, %v1231_v47 }
 0x32c   :  { %v873_v18 = vpop.f32.mrf.mxu1 }
 0x32d   :  { %v609_v19 = vmax.f32 %v606_v17, 0.0 }
 0x32f   :  { %907 = vmatmul.mubr.f32.vlgmr.msra.gmra.mxu0 %v609_v19 }
 0x3ef   :  { %v699_v21 = vpop.f32.mrf.mxu0 }
 0x3f0   :  { %v700_v22 = vadd.f32 %v724_v20, %v699_v21 }
 0x3f1   :  { %v908_v23 = vpop.f32.mrf.mxu0 }
 0x3f2   :  { %v725_v24 = vmul.f32 -1.442695, %v700_v22 }
 0x3f4   :  { %922 = vpow2.f32 %v725_v24 }
 0x401   :  { %v923_v25 = vpop.eup %922 }
 0x402   :  { %v706_v26 = vadd.f32 1.0, %v923_v25 }
 0x404   :  { %924 = vrcp.f32 %v706_v26 }
 0x411   :  { %v925_v1 = vpop.eup %924 }
 0x412   :  { %710 = vst.msk [vmem:[%s1269_s10] sm:$0xff] %vm709_vm4, %v925_v1 }
 0x413   :  { %715 = vsyncpa [#allocation3], 1 }
 0x414   :  { %716 = vsyncpa [#allocation5], 1 }
 0x415   :  { %717 = vsyncpa [#allocation8], 1 }
 0x416   :  { %718 = vsyncpa [#allocation11], 1 }

</bundles_post_ra>
